<compile_context>
chip_gen: v7x
topology: tpu7x:2x2x1
jax: 0.10.0
libtpu: 0.0.40
codegen_flags: <defaults>
</compile_context>

<pallas_src>
import functools

import jax
import jax.numpy as jnp
from jax.experimental import pallas as pl
from jax.experimental.pallas import tpu as pltpu

_SQRT_HALF = 0.7071067811865476


def _head_transform_kernel(x_ref, w_ref, b_ref, g_ref, beta_ref, o_ref, *, eps):
    # x_ref: (tm, H)   w_ref: (H, H) already (in, out)   b/g/beta: (1, H)
    # Feed the MXU its native dtype (bf16 or f32) and accumulate in f32 -- no
    # explicit operand upcast (saves VALU slots and halves operand VMEM).
    y = jnp.dot(x_ref[...], w_ref[...], preferred_element_type=jnp.float32)
    y = y + b_ref[...].astype(jnp.float32)

    # Exact GELU (PyTorch nn.GELU default): 0.5 * y * (1 + erf(y / sqrt(2)))
    y = 0.5 * y * (1.0 + jax.lax.erf(y * jnp.float32(_SQRT_HALF)))

    # One-pass LayerNorm: sum(y) and sum(y*y) issue back-to-back on the XLU and
    # overlap with the EUP erf tail, instead of two serialized reductions.
    h_inv = jnp.float32(1.0 / y.shape[-1])
    mean = jnp.sum(y, axis=-1, keepdims=True) * h_inv
    mean_sq = jnp.sum(y * y, axis=-1, keepdims=True) * h_inv
    var = jnp.maximum(mean_sq - mean * mean, 0.0)
    inv = jax.lax.rsqrt(var + jnp.float32(eps))
    out = (y - mean) * inv * g_ref[...].astype(jnp.float32) + beta_ref[...].astype(jnp.float32)

    o_ref[...] = out.astype(o_ref.dtype)


def _round_up(a, b):
    return ((a + b - 1) // b) * b


def _build_call(kernel, m_pad, hidden, tm, out_dtype, itemsizes, single_buffer_consts):
    x_isz, w_isz, o_isz = itemsizes

    def const_spec(shape):
        # Grid-constant operands (weight / bias / LN params): single-buffer them
        # when supported to halve their VMEM footprint (matters on v7x 64 MiB).
        if single_buffer_consts:
            return pl.BlockSpec(shape, lambda i: (0,) * len(shape),
                                pipeline_mode=pl.Buffered(1))
        return pl.BlockSpec(shape, lambda i: (0,) * len(shape))

    const_buf = 1 if single_buffer_consts else 2
    vmem_need = (
        2 * tm * hidden * x_isz                          # double-buffered x tile
        + 2 * tm * hidden * o_isz                        # double-buffered out tile
        + const_buf * (hidden * hidden + 3 * hidden) * w_isz  # weight + b + gamma + beta
    )
    vmem_limit = int(min(vmem_need + (8 << 20), 128 << 20))

    cost = pl.CostEstimate(
        flops=2 * m_pad * hidden * hidden,
        transcendentals=m_pad * hidden,                   # erf per output element
        bytes_accessed=m_pad * hidden * (x_isz + o_isz)
        + (hidden * hidden + 3 * hidden) * w_isz,
    )

    return pl.pallas_call(
        kernel,
        out_shape=jax.ShapeDtypeStruct((m_pad, hidden), out_dtype),
        grid_spec=pltpu.PrefetchScalarGridSpec(
            num_scalar_prefetch=0,
            grid=(m_pad // tm,),
            in_specs=[
                pl.BlockSpec((tm, hidden), lambda i: (i, 0)),   # x rows
                const_spec((hidden, hidden)),                   # weight (resident)
                const_spec((1, hidden)),                        # bias
                const_spec((1, hidden)),                        # LN gamma
                const_spec((1, hidden)),                        # LN beta
            ],
            out_specs=pl.BlockSpec((tm, hidden), lambda i: (i, 0)),
        ),
        compiler_params=pltpu.CompilerParams(
            dimension_semantics=("parallel",),   # megacore-shardable row axis
            vmem_limit_bytes=vmem_limit,
        ),
        cost_estimate=cost,
    )


def visual_prediction_head_transform(x, weight, bias, gamma, beta, *, eps=1e-12, tm=512):
    """x: [..., H]; weight: PyTorch nn.Linear weight of shape (H_out, H_in)."""
    orig_shape = x.shape
    H = orig_shape[-1]
    x2d = x.reshape(-1, H)
    M = x2d.shape[0]

    # Row tile: large (default 512, 128-aligned) to keep the MXU fed and amortize
    # the ~0.35us/step pipeline overhead; clamped to the (8-padded) row count so
    # tiny problems run as a single grid step. Ragged M is handled by padding.
    tm_eff = max(8, min(_round_up(tm, 8), _round_up(M, 8)))
    m_pad = _round_up(M, tm_eff)
    if m_pad != M:
        x2d = jnp.pad(x2d, ((0, m_pad - M), (0, 0)))

    w_t = weight.T                # (in, out) so the kernel computes x @ W
    b2d = bias.reshape(1, H)
    g2d = gamma.reshape(1, H)
    beta2d = beta.reshape(1, H)

    kernel = functools.partial(_head_transform_kernel, eps=eps)
    itemsizes = (jnp.dtype(x.dtype).itemsize,
                 jnp.dtype(weight.dtype).itemsize,
                 jnp.dtype(x.dtype).itemsize)

    try:
        call = _build_call(kernel, m_pad, H, tm_eff, x.dtype, itemsizes, True)
        out = call(x2d, w_t, b2d, g2d, beta2d)
    except Exception:
        # Fallback if pl.Buffered(1) on grid-constant inputs is unsupported in
        # this runtime: plain double-buffered constant blocks (still correct).
        call = _build_call(kernel, m_pad, H, tm_eff, x.dtype, itemsizes, False)
        out = call(x2d, w_t, b2d, g2d, beta2d)

    if m_pad != M:
        out = out[:M]
    return out.reshape(orig_shape)


def _reference(x, weight, bias, gamma, beta, eps):
    y = x @ weight.T + bias
    y = 0.5 * y * (1.0 + jax.lax.erf(y / jnp.sqrt(2.0)))
    mu = jnp.mean(y, axis=-1, keepdims=True)
    var = jnp.mean((y - mu) ** 2, axis=-1, keepdims=True)
    return (y - mu) / jnp.sqrt(var + eps) * gamma + beta


if __name__ == "__main__":
    # Small config consistent with the module: hidden_size=32, layer_norm_eps=1e-12.
    B, S, H = 2, 8, 32
    eps = 1e-12

    key = jax.random.PRNGKey(0)
    kx, kw, kb, kg, kbeta, kx2 = jax.random.split(key, 6)

    x = jax.random.normal(kx, (B, S, H), dtype=jnp.float32)
    # Deterministic synthetic parameters (PyTorch nn.Linear weight shape: (out, in)).
    weight = jax.random.normal(kw, (H, H), dtype=jnp.float32) * (1.0 / jnp.sqrt(H))
    bias = jax.random.normal(kb, (H,), dtype=jnp.float32) * 0.01
    gamma = 1.0 + 0.1 * jax.random.normal(kg, (H,), dtype=jnp.float32)
    beta = 0.1 * jax.random.normal(kbeta, (H,), dtype=jnp.float32)

    out = visual_prediction_head_transform(x, weight, bias, gamma, beta, eps=eps)
    out = jax.block_until_ready(out)
    ref = _reference(x, weight, bias, gamma, beta, eps)
    assert out.shape == (B, S, H)
    assert jnp.allclose(out, ref, atol=1e-4, rtol=1e-4), float(jnp.max(jnp.abs(out - ref)))

    # Ragged row-count case (exercises the pad-and-slice path; row count not a tile multiple).
    x2 = jax.random.normal(kx2, (3, 7, H), dtype=jnp.float32)
    out2 = visual_prediction_head_transform(x2, weight, bias, gamma, beta, eps=eps)
    out2 = jax.block_until_ready(out2)
    ref2 = _reference(x2, weight, bias, gamma, beta, eps)
    assert out2.shape == (3, 7, H)
    assert jnp.allclose(out2, ref2, atol=1e-4, rtol=1e-4), float(jnp.max(jnp.abs(out2 - ref2)))

    print("KERNEL_OK")
</pallas_src>

<mosaic_0001>
module attributes {stable_mosaic.version = 11 : i64} {
  func.func @_head_transform_kernel(%arg0: i32, %arg1: memref<16x32xf32, #tpu.memory_space<vmem>>, %arg2: memref<32x32xf32, #tpu.memory_space<vmem>>, %arg3: memref<1x32xf32, #tpu.memory_space<vmem>>, %arg4: memref<1x32xf32, #tpu.memory_space<vmem>>, %arg5: memref<1x32xf32, #tpu.memory_space<vmem>>, %arg6: memref<16x32xf32, #tpu.memory_space<vmem>>) attributes {dimension_semantics = [#tpu.dimension_semantics<parallel>], iteration_bounds = array<i64: 1>, scalar_prefetch = 0 : i64, scratch_operands = 0 : i64, tpu.core_type = #tpu.core_type<tc>, window_params = [{transform_indices = @transform_0, window_bounds = array<i64: 16, 32>}, {pipeline_mode = #tpu.pipeline_mode<synchronous>, transform_indices = @transform_1, window_bounds = array<i64: 32, 32>}, {pipeline_mode = #tpu.pipeline_mode<synchronous>, transform_indices = @transform_2, window_bounds = array<i64: 1, 32>}, {pipeline_mode = #tpu.pipeline_mode<synchronous>, transform_indices = @transform_3, window_bounds = array<i64: 1, 32>}, {pipeline_mode = #tpu.pipeline_mode<synchronous>, transform_indices = @transform_4, window_bounds = array<i64: 1, 32>}, {transform_indices = @transform_5, window_bounds = array<i64: 16, 32>}]} {
    %c0 = arith.constant 0 : index
    %c0_0 = arith.constant 0 : index
    %0 = vector.load %arg1[%c0, %c0_0] : memref<16x32xf32, #tpu.memory_space<vmem>>, vector<16x32xf32>
    %c0_1 = arith.constant 0 : index
    %c0_2 = arith.constant 0 : index
    %1 = vector.load %arg2[%c0_1, %c0_2] : memref<32x32xf32, #tpu.memory_space<vmem>>, vector<32x32xf32>
    %cst = arith.constant dense<0.000000e+00> : vector<16x32xf32>
    %2 = tpu.matmul %0, %1, %cst {dimension_numbers = #tpu.dot_dimension_numbers<[1], [0], [0], [1], [0, 0, 1, 1], [], []>} : vector<16x32xf32>, vector<32x32xf32>, vector<16x32xf32> -> vector<16x32xf32>
    %c0_3 = arith.constant 0 : index
    %c0_4 = arith.constant 0 : index
    %3 = vector.load %arg3[%c0_3, %c0_4] : memref<1x32xf32, #tpu.memory_space<vmem>>, vector<1x32xf32>
    %4 = vector.broadcast %3 : vector<1x32xf32> to vector<16x32xf32>
    %5 = arith.addf %2, %4 : vector<16x32xf32>
    %cst_5 = arith.constant 5.000000e-01 : f32
    %6 = vector.broadcast %cst_5 : f32 to vector<16x32xf32>
    %7 = arith.mulf %6, %5 : vector<16x32xf32>
    %cst_6 = arith.constant 0.707106769 : f32
    %8 = vector.broadcast %cst_6 : f32 to vector<16x32xf32>
    %9 = arith.mulf %5, %8 : vector<16x32xf32>
    %10 = math.erf %9 : vector<16x32xf32>
    %cst_7 = arith.constant 1.000000e+00 : f32
    %11 = vector.broadcast %cst_7 : f32 to vector<16x32xf32>
    %12 = arith.addf %11, %10 : vector<16x32xf32>
    %13 = arith.mulf %7, %12 : vector<16x32xf32>
    %cst_8 = arith.constant dense<0.000000e+00> : vector<16xf32>
    %14 = vector.multi_reduction <add>, %13, %cst_8 [1] : vector<16x32xf32> to vector<16xf32>
    %15 = vector.shape_cast %14 : vector<16xf32> to vector<16x1xf32>
    %cst_9 = arith.constant 3.125000e-02 : f32
    %16 = vector.broadcast %cst_9 : f32 to vector<16x1xf32>
    %17 = arith.mulf %15, %16 : vector<16x1xf32>
    %18 = arith.mulf %13, %13 : vector<16x32xf32>
    %cst_10 = arith.constant dense<0.000000e+00> : vector<16xf32>
    %19 = vector.multi_reduction <add>, %18, %cst_10 [1] : vector<16x32xf32> to vector<16xf32>
    %20 = vector.shape_cast %19 : vector<16xf32> to vector<16x1xf32>
    %cst_11 = arith.constant 3.125000e-02 : f32
    %21 = vector.broadcast %cst_11 : f32 to vector<16x1xf32>
    %22 = arith.mulf %20, %21 : vector<16x1xf32>
    %23 = arith.mulf %17, %17 : vector<16x1xf32>
    %24 = arith.subf %22, %23 : vector<16x1xf32>
    %cst_12 = arith.constant 0.000000e+00 : f32
    %25 = vector.broadcast %cst_12 : f32 to vector<16x1xf32>
    %26 = arith.maximumf %24, %25 : vector<16x1xf32>
    %cst_13 = arith.constant 9.99999996E-13 : f32
    %27 = vector.broadcast %cst_13 : f32 to vector<16x1xf32>
    %28 = arith.addf %26, %27 : vector<16x1xf32>
    %29 = math.rsqrt %28 : vector<16x1xf32>
    %30 = vector.broadcast %17 : vector<16x1xf32> to vector<16x32xf32>
    %31 = arith.subf %13, %30 : vector<16x32xf32>
    %32 = vector.broadcast %29 : vector<16x1xf32> to vector<16x32xf32>
    %33 = arith.mulf %31, %32 : vector<16x32xf32>
    %c0_14 = arith.constant 0 : index
    %c0_15 = arith.constant 0 : index
    %34 = vector.load %arg4[%c0_14, %c0_15] : memref<1x32xf32, #tpu.memory_space<vmem>>, vector<1x32xf32>
    %35 = vector.broadcast %34 : vector<1x32xf32> to vector<16x32xf32>
    %36 = arith.mulf %33, %35 : vector<16x32xf32>
    %c0_16 = arith.constant 0 : index
    %c0_17 = arith.constant 0 : index
    %37 = vector.load %arg5[%c0_16, %c0_17] : memref<1x32xf32, #tpu.memory_space<vmem>>, vector<1x32xf32>
    %38 = vector.broadcast %37 : vector<1x32xf32> to vector<16x32xf32>
    %39 = arith.addf %36, %38 : vector<16x32xf32>
    %c0_18 = arith.constant 0 : index
    %c0_19 = arith.constant 0 : index
    %40 = vector.load %arg6[%c0_18, %c0_19] : memref<16x32xf32, #tpu.memory_space<vmem>>, vector<16x32xf32>
    tpu.vector_store %arg6[%c0_18, %c0_19], %39 {strides = array<i32>} : memref<16x32xf32, #tpu.memory_space<vmem>>, vector<16x32xf32>,
    return
  }
  func.func @transform_0(%arg0: i32) -> (i32, i32) {
    %c0_i32 = arith.constant 0 : i32
    %c0_i32_0 = arith.constant 0 : i32
    return %arg0, %c0_i32 : i32, i32
  }
  func.func @transform_1(%arg0: i32) -> (i32, i32) {
    %c0_i32 = arith.constant 0 : i32
    %c0_i32_0 = arith.constant 0 : i32
    %c0_i32_1 = arith.constant 0 : i32
    return %c0_i32, %c0_i32_0 : i32, i32
  }
  func.func @transform_2(%arg0: i32) -> (i32, i32) {
    %c0_i32 = arith.constant 0 : i32
    %c0_i32_0 = arith.constant 0 : i32
    %c0_i32_1 = arith.constant 0 : i32
    return %c0_i32, %c0_i32_0 : i32, i32
  }
  func.func @transform_3(%arg0: i32) -> (i32, i32) {
    %c0_i32 = arith.constant 0 : i32
    %c0_i32_0 = arith.constant 0 : i32
    %c0_i32_1 = arith.constant 0 : i32
    return %c0_i32, %c0_i32_0 : i32, i32
  }
  func.func @transform_4(%arg0: i32) -> (i32, i32) {
    %c0_i32 = arith.constant 0 : i32
    %c0_i32_0 = arith.constant 0 : i32
    %c0_i32_1 = arith.constant 0 : i32
    return %c0_i32, %c0_i32_0 : i32, i32
  }
  func.func @transform_5(%arg0: i32) -> (i32, i32) {
    %c0_i32 = arith.constant 0 : i32
    %c0_i32_0 = arith.constant 0 : i32
    return %arg0, %c0_i32 : i32, i32
  }
}

module attributes {stable_mosaic.version = 11 : i64} {
  func.func @_head_transform_kernel(%arg0: i32, %arg1: memref<16x32xf32, #tpu.memory_space<vmem>>, %arg2: memref<32x32xf32, #tpu.memory_space<vmem>>, %arg3: memref<1x32xf32, #tpu.memory_space<vmem>>, %arg4: memref<1x32xf32, #tpu.memory_space<vmem>>, %arg5: memref<1x32xf32, #tpu.memory_space<vmem>>, %arg6: memref<16x32xf32, #tpu.memory_space<vmem>>) attributes {dimension_semantics = [#tpu.dimension_semantics<parallel>], iteration_bounds = array<i64: 1>, scalar_prefetch = 0 : i64, scratch_operands = 0 : i64, tpu.core_type = #tpu.core_type<tc>, window_params = [{transform_indices = @transform_0, window_bounds = array<i64: 16, 32>}, {pipeline_mode = #tpu.pipeline_mode<synchronous>, transform_indices = @transform_1, window_bounds = array<i64: 32, 32>}, {pipeline_mode = #tpu.pipeline_mode<synchronous>, transform_indices = @transform_2, window_bounds = array<i64: 1, 32>}, {pipeline_mode = #tpu.pipeline_mode<synchronous>, transform_indices = @transform_3, window_bounds = array<i64: 1, 32>}, {pipeline_mode = #tpu.pipeline_mode<synchronous>, transform_indices = @transform_4, window_bounds = array<i64: 1, 32>}, {transform_indices = @transform_5, window_bounds = array<i64: 16, 32>}]} {
    %c0 = arith.constant 0 : index
    %c0_0 = arith.constant 0 : index
    %0 = vector.load %arg1[%c0, %c0_0] : memref<16x32xf32, #tpu.memory_space<vmem>>, vector<16x32xf32>
    %c0_1 = arith.constant 0 : index
    %c0_2 = arith.constant 0 : index
    %1 = vector.load %arg2[%c0_1, %c0_2] : memref<32x32xf32, #tpu.memory_space<vmem>>, vector<32x32xf32>
    %cst = arith.constant dense<0.000000e+00> : vector<16x32xf32>
    %2 = tpu.matmul %0, %1, %cst {dimension_numbers = #tpu.dot_dimension_numbers<[1], [0], [0], [1], [0, 0, 1, 1], [], []>} : vector<16x32xf32>, vector<32x32xf32>, vector<16x32xf32> -> vector<16x32xf32>
    %c0_3 = arith.constant 0 : index
    %c0_4 = arith.constant 0 : index
    %3 = vector.load %arg3[%c0_3, %c0_4] : memref<1x32xf32, #tpu.memory_space<vmem>>, vector<1x32xf32>
    %4 = vector.broadcast %3 : vector<1x32xf32> to vector<16x32xf32>
    %5 = arith.addf %2, %4 : vector<16x32xf32>
    %cst_5 = arith.constant 5.000000e-01 : f32
    %6 = vector.broadcast %cst_5 : f32 to vector<16x32xf32>
    %7 = arith.mulf %6, %5 : vector<16x32xf32>
    %cst_6 = arith.constant 0.707106769 : f32
    %8 = vector.broadcast %cst_6 : f32 to vector<16x32xf32>
    %9 = arith.mulf %5, %8 : vector<16x32xf32>
    %10 = math.erf %9 : vector<16x32xf32>
    %cst_7 = arith.constant 1.000000e+00 : f32
    %11 = vector.broadcast %cst_7 : f32 to vector<16x32xf32>
    %12 = arith.addf %11, %10 : vector<16x32xf32>
    %13 = arith.mulf %7, %12 : vector<16x32xf32>
    %cst_8 = arith.constant dense<0.000000e+00> : vector<16xf32>
    %14 = vector.multi_reduction <add>, %13, %cst_8 [1] : vector<16x32xf32> to vector<16xf32>
    %15 = vector.shape_cast %14 : vector<16xf32> to vector<16x1xf32>
    %cst_9 = arith.constant 3.125000e-02 : f32
    %16 = vector.broadcast %cst_9 : f32 to vector<16x1xf32>
    %17 = arith.mulf %15, %16 : vector<16x1xf32>
    %18 = arith.mulf %13, %13 : vector<16x32xf32>
    %cst_10 = arith.constant dense<0.000000e+00> : vector<16xf32>
    %19 = vector.multi_reduction <add>, %18, %cst_10 [1] : vector<16x32xf32> to vector<16xf32>
    %20 = vector.shape_cast %19 : vector<16xf32> to vector<16x1xf32>
    %cst_11 = arith.constant 3.125000e-02 : f32
    %21 = vector.broadcast %cst_11 : f32 to vector<16x1xf32>
    %22 = arith.mulf %20, %21 : vector<16x1xf32>
    %23 = arith.mulf %17, %17 : vector<16x1xf32>
    %24 = arith.subf %22, %23 : vector<16x1xf32>
    %cst_12 = arith.constant 0.000000e+00 : f32
    %25 = vector.broadcast %cst_12 : f32 to vector<16x1xf32>
    %26 = arith.maximumf %24, %25 : vector<16x1xf32>
    %cst_13 = arith.constant 9.99999996E-13 : f32
    %27 = vector.broadcast %cst_13 : f32 to vector<16x1xf32>
    %28 = arith.addf %26, %27 : vector<16x1xf32>
    %29 = math.rsqrt %28 : vector<16x1xf32>
    %30 = vector.broadcast %17 : vector<16x1xf32> to vector<16x32xf32>
    %31 = arith.subf %13, %30 : vector<16x32xf32>
    %32 = vector.broadcast %29 : vector<16x1xf32> to vector<16x32xf32>
    %33 = arith.mulf %31, %32 : vector<16x32xf32>
    %c0_14 = arith.constant 0 : index
    %c0_15 = arith.constant 0 : index
    %34 = vector.load %arg4[%c0_14, %c0_15] : memref<1x32xf32, #tpu.memory_space<vmem>>, vector<1x32xf32>
    %35 = vector.broadcast %34 : vector<1x32xf32> to vector<16x32xf32>
    %36 = arith.mulf %33, %35 : vector<16x32xf32>
    %c0_16 = arith.constant 0 : index
    %c0_17 = arith.constant 0 : index
    %37 = vector.load %arg5[%c0_16, %c0_17] : memref<1x32xf32, #tpu.memory_space<vmem>>, vector<1x32xf32>
    %38 = vector.broadcast %37 : vector<1x32xf32> to vector<16x32xf32>
    %39 = arith.addf %36, %38 : vector<16x32xf32>
    %c0_18 = arith.constant 0 : index
    %c0_19 = arith.constant 0 : index
    %40 = vector.load %arg6[%c0_18, %c0_19] : memref<16x32xf32, #tpu.memory_space<vmem>>, vector<16x32xf32>
    tpu.vector_store %arg6[%c0_18, %c0_19], %39 {strides = array<i32>} : memref<16x32xf32, #tpu.memory_space<vmem>>, vector<16x32xf32>,
    return
  }
  func.func @transform_0(%arg0: i32) -> (i32, i32) {
    %c0_i32 = arith.constant 0 : i32
    %c0_i32_0 = arith.constant 0 : i32
    return %arg0, %c0_i32 : i32, i32
  }
  func.func @transform_1(%arg0: i32) -> (i32, i32) {
    %c0_i32 = arith.constant 0 : i32
    %c0_i32_0 = arith.constant 0 : i32
    %c0_i32_1 = arith.constant 0 : i32
    return %c0_i32, %c0_i32_0 : i32, i32
  }
  func.func @transform_2(%arg0: i32) -> (i32, i32) {
    %c0_i32 = arith.constant 0 : i32
    %c0_i32_0 = arith.constant 0 : i32
    %c0_i32_1 = arith.constant 0 : i32
    return %c0_i32, %c0_i32_0 : i32, i32
  }
  func.func @transform_3(%arg0: i32) -> (i32, i32) {
    %c0_i32 = arith.constant 0 : i32
    %c0_i32_0 = arith.constant 0 : i32
    %c0_i32_1 = arith.constant 0 : i32
    return %c0_i32, %c0_i32_0 : i32, i32
  }
  func.func @transform_4(%arg0: i32) -> (i32, i32) {
    %c0_i32 = arith.constant 0 : i32
    %c0_i32_0 = arith.constant 0 : i32
    %c0_i32_1 = arith.constant 0 : i32
    return %c0_i32, %c0_i32_0 : i32, i32
  }
  func.func @transform_5(%arg0: i32) -> (i32, i32) {
    %c0_i32 = arith.constant 0 : i32
    %c0_i32_0 = arith.constant 0 : i32
    return %arg0, %c0_i32 : i32, i32
  }
}

</mosaic_0001>

<bundles_post_ra>
// kernel: tpu_custom_call.1
= control target key start
LH: loop header
LB: loop body
LE: loop exit
PB: predicated region body
PF: predicated region fallthrough
CT: control target
= control target key end

     0   :  { %10 = vsyncpa [#allocation3], 0  ;;  %s436_s0 = inlined_call_operand.hbm [shape: f32[16,32], index: 0, kind: input, shape index: {}]   ;;  %s437_s1 = inlined_call_operand.hbm [shape: f32[32,32], index: 1, kind: input, shape index: {}]   ;;  %s438_s2 = inlined_call_operand.vmem [shape: f32[1,32], index: 2, kind: input, shape index: {}]   ;;  %s439_s3 = inlined_call_operand.vmem [shape: f32[1,32], index: 3, kind: input, shape index: {}]   ;;  %s440_s4 = inlined_call_operand.vmem [shape: f32[1,32], index: 4, kind: input, shape index: {}]   ;;  %s441_s5 = inlined_call_operand.hbm [shape: f32[16,32], index: 5, kind: output, shape index: {}]  }
   0x1   :  { %11 = vsyncpa [#allocation6], 0 }
   0x2   :  { %12 = vsyncpa [#allocation4], 0  ;;  %s339_s18 = smov [#allocation2]   ;;  %s267_s22 = scalar_lea.hbm %s436_s0, 256 }
   0x3   :  { %s18_s19 = sshll.u32 %s339_s18, 4  ;;  %p268_p0 = scmp.ne.s32.totalorder %s436_s0, %s267_s22  ;;  %s19_s19 = int_to_ptr.vmem [resolvable:$true] %s18_s19 }
   0x4   :  { %p271_p1 = scmp.lt.u32.totalorder %s267_s22, %s436_s0 }
   0x6   :  { %p273_p2 = pnand %p271_p1, %p268_p0 }
   0x8   :  { %276 = shalt.err (!%p273_p2)
}
   0x9   :  { %s277_s27 = scalar_lea.vmem %s19_s19, 256  ;;  %p282_p4 = scmp.lt.s32.totalorder %s19_s19, %s19_s19 }
   0xa   :  { %p278_p3 = scmp.ne.s32.totalorder %s19_s19, %s277_s27  ;;  %p283_p5 = scmp.lt.s32.totalorder %s277_s27, %s277_s27 }
   0xc   :  { %p284_p6 = por %p283_p5, %p282_p4 }
   0xe   :  { %p285_p7 = pnand %p284_p6, %p278_p3 }
  0x10   :  { %288 = shalt.err (!%p285_p7)
}
  0x11   :  { %s340_s28 = smov 128   ;;  %s341_s29 = smov 8  }
  0x12   :  { %24 = dma.hbm_to_vmem [thread:$0]  %s436_s0, 256, %s19_s19, [#allocation3], %s340_s28, %s340_s28, %s341_s29  }
  0x13   :  { %s342_s7 = smov [#allocation5]   ;;  %s289_s11 = scalar_lea.hbm %s437_s1, 512 }
  0x14   :  { %s30_s8 = sshll.u32 %s342_s7, 4  ;;  %p290_p8 = scmp.ne.s32.totalorder %s437_s1, %s289_s11  ;;  %s31_s8 = int_to_ptr.vmem [resolvable:$true] %s30_s8 }
  0x15   :  { %p293_p9 = scmp.lt.u32.totalorder %s289_s11, %s437_s1 }
  0x17   :  { %p295_p10 = pnand %p293_p9, %p290_p8 }
  0x19   :  { %298 = shalt.err (!%p295_p10)
}
  0x1a   :  { %s299_s16 = scalar_lea.vmem %s31_s8, 512  ;;  %p304_p12 = scmp.lt.s32.totalorder %s31_s8, %s31_s8 }
  0x1b   :  { %p300_p11 = scmp.ne.s32.totalorder %s31_s8, %s299_s16  ;;  %p305_p13 = scmp.lt.s32.totalorder %s299_s16, %s299_s16 }
  0x1d   :  { %p306_p0 = por %p305_p13, %p304_p12 }
  0x1f   :  { %p307_p1 = pnand %p306_p0, %p300_p11 }
  0x21   :  { %310 = shalt.err (!%p307_p1)
}
  0x22   :  { %36 = dma.hbm_to_vmem [thread:$0]  %s437_s1, 512, %s31_s8, [#allocation6], %s340_s28, %s340_s28, %s341_s29  }
  0x23   :  { %333 = dma.done.wait [#allocation3], 256  }
  0x24   :  { %334 = vsyncadd [#allocation3], 4294967040 }
  0x25   :  { %335 = dma.done.wait [#allocation6], 512  }
  0x26   :  { %336 = vsyncadd [#allocation6], 4294966784  ;;  %vm62_vm0 = vcmask 261120   ;;  %v51_v0 = vld [vmem:[#allocation5] sm:$0xff]  ;;  %v52_v1 = vld [vmem:[#allocation5 + $0x8] sm:$0xff]  ;;  %s343_s22 = smov [#allocation7]  }
  0x27   :  { %v53_v2 = vld [vmem:[#allocation5 + $0x10] sm:$0xff]  ;;  %v246_v3 = vpack.c.bf16 %v52_v1, %v51_v0  ;;  %v54_v4 = vld [vmem:[#allocation5 + $0x18] sm:$0xff]  ;;  %s211_s23 = sshll.u32 %s343_s22, 4  ;;  %s212_s23 = int_to_ptr.vmem [resolvable:$true] %s211_s23 }
  0x28   :  { %v49_v5 = vld [vmem:[#allocation2] sm:$0xff]  ;;  %v250_v6 = vpack.c.bf16 %v54_v4, %v53_v2  ;;  %v50_v7 = vld [vmem:[#allocation2 + $0x8] sm:$0xff]  ;;  %p316_p3 = scmp.lt.s32.totalorder %s212_s23, %s212_s23 }
  0x29   :  { %243 = vmatprep.mubr.msk.f32.mxu0 %vm62_vm0, %v49_v5  ;;  %247 = vmatprep.subr.bf16.mxu0 %v246_v3  ;;  %v224_v8 = vld [vmem:[%s438_s2] ss:$0 sm:$0xff] }
  0x2a   :  { %249 = vmatpush3.bf16.msra.mxu0 %v246_v3  ;;  %v227_v47 = vld [vmem:[%s439_s3] ss:$0 sm:$0xff]  ;;  %s311_s3 = scalar_lea.vmem %s212_s23, 256 }
  0x2b   :  { %251 = vmatprep.subr.bf16.mxu0 %v250_v6  ;;  %v228_v49 = vld [vmem:[%s440_s4] ss:$0 sm:$0xff]  ;;  %p312_p2 = scmp.ne.s32.totalorder %s212_s23, %s311_s3  ;;  %p317_p4 = scmp.lt.s32.totalorder %s311_s3, %s311_s3 }
  0x2d   :  { %p318_p5 = por %p317_p4, %p316_p3 }
  0x2e   :  { %253 = vmatpush3.bf16.msra.mxu0 %v250_v6 }
  0x2f   :  { %p319_p6 = pnand %p318_p5, %p312_p2 }
  0x31   :  { %244 = vmatmul.mubr.msk.f32.vlgmr.msra.gmra.mrb[0].mxu0 %vm62_vm0, %v50_v7 }
 0x104   :  { %v245_v9 = vpop.f32.mrb[0].mxu0 }
 0x105   :  { %v141_v10 = vadd.f32 %v245_v9, %v224_v8  ;;  %v135_v11 = vpop.f32.mrb[1].mxu0 }
 0x106   :  { %v136_v12 = vadd.f32 %v224_v8, %v135_v11 }
 0x107   :  { %v147_v13 = vmul.f32 0.70710677, %v141_v10  ;;  %v145_v18 = vmul.f32 0.5, %v141_v10 }
 0x108   :  { %v146_v14 = vmul.f32 0.70710677, %v136_v12  ;;  %v144_v19 = vmul.f32 0.5, %v136_v12 }
 0x109   :  { %259 = verf.f32 %v147_v13 }
 0x10a   :  { %261 = verf.f32 %v146_v14 }
 0x113   :  { %v260_v15 = vpop.eup %259 }
 0x114   :  { %v262_v16 = vpop.eup %261  ;;  %v151_v17 = vadd.f32 1.0, %v260_v15 }
 0x115   :  { %v150_v20 = vadd.f32 1.0, %v262_v16 }
 0x116   :  { %v153_v21 = vmul.f32 %v151_v17, %v145_v18 }
 0x117   :  { %v152_v22 = vmul.f32 %v150_v20, %v144_v19 }
 0x118   :  { %v163_v26 = vmul.f32 %v153_v21, %v153_v21  ;;  %v157_v27 = vsel %vm62_vm0, %v153_v21, 0.0 }
 0x119   :  { %v154_v23 = vsel %vm62_vm0, %v152_v22, 0.0  ;;  %v162_v24 = vmul.f32 %v152_v22, %v152_v22 }
 0x11a   :  { %155 = vadd.xlane.f32.xlu0 %v154_v23  ;;  %v167_v28 = vsel %vm62_vm0, %v163_v26, 0.0 }
 0x11b   :  { %v164_v25 = vsel %vm62_vm0, %v162_v24, 0.0 }
 0x11c   :  { %165 = vadd.xlane.f32.xlu1 %v164_v25 }
 0x11e   :  { %158 = vadd.xlane.f32.xlu0 %v157_v27 }
 0x120   :  { %168 = vadd.xlane.f32.xlu1 %v167_v28 }
 0x1a7   :  { %v156_v29 = vpop.xlane.xlu0 %155 }
 0x1a8   :  { %v160_v30 = vmul.f32 0.03125, %v156_v29 }
 0x1a9   :  { %v166_v31 = vpop.xlane.xlu1 %165 }
 0x1aa   :  { %v172_v32 = vmul.f32 %v160_v30, %v160_v30  ;;  %v170_v33 = vmul.f32 0.03125, %v166_v31  ;;  %v182_v45 = vsub.f32 %v152_v22, %v160_v30 }
 0x1ab   :  { %v159_v34 = vpop.xlane.xlu0 %158 }
 0x1ac   :  { %v174_v35 = vsub.f32 %v170_v33, %v172_v32  ;;  %v161_v36 = vmul.f32 0.03125, %v159_v34 }
 0x1ad   :  { %v169_v37 = vpop.xlane.xlu1 %168 }
 0x1ae   :  { %v176_v38 = vmax.f32 %v174_v35, 0.0  ;;  %v173_v39 = vmul.f32 %v161_v36, %v161_v36  ;;  %v171_v40 = vmul.f32 0.03125, %v169_v37  ;;  %v183_v50 = vsub.f32 %v153_v21, %v161_v36 }
 0x1b0   :  { %v178_v41 = vadd.f32 1e-12, %v176_v38  ;;  %v175_v42 = vsub.f32 %v171_v40, %v173_v39 }
 0x1b2   :  { %263 = vrsqrt.f32 %v178_v41  ;;  %v177_v43 = vmax.f32 %v175_v42, 0.0 }
 0x1b4   :  { %v179_v44 = vadd.f32 1e-12, %v177_v43 }
 0x1b6   :  { %265 = vrsqrt.f32 %v179_v44 }
 0x1bc   :  { %v264_v46 = vpop.eup %263 }
 0x1bd   :  { %v184_v48 = vmul.f32 %v264_v46, %v182_v45 }
 0x1bf   :  { %v193_v51 = vmul.f32 %v227_v47, %v184_v48 }
 0x1c0   :  { %v266_v52 = vpop.eup %265 }
 0x1c1   :  { %v185_v53 = vmul.f32 %v266_v52, %v183_v50  ;;  %v202_v54 = vadd.f32 %v228_v49, %v193_v51 }
 0x1c3   :  { %v194_v55 = vmul.f32 %v227_v47, %v185_v53  ;;  %204 = vst.msk [vmem:[#allocation7] sm:$0xff] %vm62_vm0, %v202_v54 }
 0x1c5   :  { %v203_v56 = vadd.f32 %v228_v49, %v194_v55 }
 0x1c7   :  { %205 = vst.msk [vmem:[#allocation7 + $0x8] sm:$0xff] %vm62_vm0, %v203_v56 }
 0x1c8   :  { %322 = shalt.err (!%p319_p6)
}
 0x1c9   :  { %s323_s25 = scalar_lea.hbm %s441_s5, 256 }
 0x1ca   :  { %p324_p7 = scmp.ne.s32.totalorder %s441_s5, %s323_s25  ;;  %p327_p8 = scmp.lt.u32.totalorder %s323_s25, %s441_s5 }
 0x1cc   :  { %p329_p9 = pnand %p327_p8, %p324_p7 }
 0x1ce   :  { %332 = shalt.err (!%p329_p9)
}
 0x1cf   :  { %217 = dma.vmem_to_hbm [thread:$0]  %s212_s23, 256, %s441_s5, [#allocation4], %s340_s28, %s340_s28, %s341_s29  }
 0x1d0   :  { %337 = dma.done.wait [#allocation4], 256  }
 0x1d1   :  { %338 = vsyncadd [#allocation4], 4294967040 }
 0x1d2   :  { %221 = vsyncpa [#allocation3], 1 }
 0x1d3   :  { %222 = vsyncpa [#allocation6], 1 }
 0x1d4   :  { %223 = vsyncpa [#allocation4], 1 }

// kernel: tpu_custom_call.1
= control target key start
LH: loop header
LB: loop body
LE: loop exit
PB: predicated region body
PF: predicated region fallthrough
CT: control target
= control target key end

     0   :  { %10 = vsyncpa [#allocation3], 0  ;;  %s436_s0 = inlined_call_operand.hbm [shape: f32[16,32], index: 0, kind: input, shape index: {}]   ;;  %s437_s1 = inlined_call_operand.hbm [shape: f32[32,32], index: 1, kind: input, shape index: {}]   ;;  %s438_s2 = inlined_call_operand.vmem [shape: f32[1,32], index: 2, kind: input, shape index: {}]   ;;  %s439_s3 = inlined_call_operand.vmem [shape: f32[1,32], index: 3, kind: input, shape index: {}]   ;;  %s440_s4 = inlined_call_operand.vmem [shape: f32[1,32], index: 4, kind: input, shape index: {}]   ;;  %s441_s5 = inlined_call_operand.hbm [shape: f32[16,32], index: 5, kind: output, shape index: {}]  }
   0x1   :  { %11 = vsyncpa [#allocation6], 0 }
   0x2   :  { %12 = vsyncpa [#allocation4], 0  ;;  %s339_s18 = smov [#allocation2]   ;;  %s267_s22 = scalar_lea.hbm %s436_s0, 256 }
   0x3   :  { %s18_s19 = sshll.u32 %s339_s18, 4  ;;  %p268_p0 = scmp.ne.s32.totalorder %s436_s0, %s267_s22  ;;  %s19_s19 = int_to_ptr.vmem [resolvable:$true] %s18_s19 }
   0x4   :  { %p271_p1 = scmp.lt.u32.totalorder %s267_s22, %s436_s0 }
   0x6   :  { %p273_p2 = pnand %p271_p1, %p268_p0 }
   0x8   :  { %276 = shalt.err (!%p273_p2)
}
   0x9   :  { %s277_s27 = scalar_lea.vmem %s19_s19, 256  ;;  %p282_p4 = scmp.lt.s32.totalorder %s19_s19, %s19_s19 }
   0xa   :  { %p278_p3 = scmp.ne.s32.totalorder %s19_s19, %s277_s27  ;;  %p283_p5 = scmp.lt.s32.totalorder %s277_s27, %s277_s27 }
   0xc   :  { %p284_p6 = por %p283_p5, %p282_p4 }
   0xe   :  { %p285_p7 = pnand %p284_p6, %p278_p3 }
  0x10   :  { %288 = shalt.err (!%p285_p7)
}
  0x11   :  { %s340_s28 = smov 128   ;;  %s341_s29 = smov 8  }
  0x12   :  { %24 = dma.hbm_to_vmem [thread:$0]  %s436_s0, 256, %s19_s19, [#allocation3], %s340_s28, %s340_s28, %s341_s29  }
  0x13   :  { %s342_s7 = smov [#allocation5]   ;;  %s289_s11 = scalar_lea.hbm %s437_s1, 512 }
  0x14   :  { %s30_s8 = sshll.u32 %s342_s7, 4  ;;  %p290_p8 = scmp.ne.s32.totalorder %s437_s1, %s289_s11  ;;  %s31_s8 = int_to_ptr.vmem [resolvable:$true] %s30_s8 }
  0x15   :  { %p293_p9 = scmp.lt.u32.totalorder %s289_s11, %s437_s1 }
  0x17   :  { %p295_p10 = pnand %p293_p9, %p290_p8 }
  0x19   :  { %298 = shalt.err (!%p295_p10)
}
  0x1a   :  { %s299_s16 = scalar_lea.vmem %s31_s8, 512  ;;  %p304_p12 = scmp.lt.s32.totalorder %s31_s8, %s31_s8 }
  0x1b   :  { %p300_p11 = scmp.ne.s32.totalorder %s31_s8, %s299_s16  ;;  %p305_p13 = scmp.lt.s32.totalorder %s299_s16, %s299_s16 }
  0x1d   :  { %p306_p0 = por %p305_p13, %p304_p12 }
  0x1f   :  { %p307_p1 = pnand %p306_p0, %p300_p11 }
  0x21   :  { %310 = shalt.err (!%p307_p1)
}
  0x22   :  { %36 = dma.hbm_to_vmem [thread:$0]  %s437_s1, 512, %s31_s8, [#allocation6], %s340_s28, %s340_s28, %s341_s29  }
  0x23   :  { %333 = dma.done.wait [#allocation3], 256  }
  0x24   :  { %334 = vsyncadd [#allocation3], 4294967040 }
  0x25   :  { %335 = dma.done.wait [#allocation6], 512  }
  0x26   :  { %336 = vsyncadd [#allocation6], 4294966784  ;;  %vm62_vm0 = vcmask 261120   ;;  %v51_v0 = vld [vmem:[#allocation5] sm:$0xff]  ;;  %v52_v1 = vld [vmem:[#allocation5 + $0x8] sm:$0xff]  ;;  %s343_s22 = smov [#allocation7]  }
  0x27   :  { %v53_v2 = vld [vmem:[#allocation5 + $0x10] sm:$0xff]  ;;  %v246_v3 = vpack.c.bf16 %v52_v1, %v51_v0  ;;  %v54_v4 = vld [vmem:[#allocation5 + $0x18] sm:$0xff]  ;;  %s211_s23 = sshll.u32 %s343_s22, 4  ;;  %s212_s23 = int_to_ptr.vmem [resolvable:$true] %s211_s23 }
  0x28   :  { %v49_v5 = vld [vmem:[#allocation2] sm:$0xff]  ;;  %v250_v6 = vpack.c.bf16 %v54_v4, %v53_v2  ;;  %v50_v7 = vld [vmem:[#allocation2 + $0x8] sm:$0xff]  ;;  %p316_p3 = scmp.lt.s32.totalorder %s212_s23, %s212_s23 }
  0x29   :  { %243 = vmatprep.mubr.msk.f32.mxu0 %vm62_vm0, %v49_v5  ;;  %247 = vmatprep.subr.bf16.mxu0 %v246_v3  ;;  %v224_v8 = vld [vmem:[%s438_s2] ss:$0 sm:$0xff] }
  0x2a   :  { %249 = vmatpush3.bf16.msra.mxu0 %v246_v3  ;;  %v227_v47 = vld [vmem:[%s439_s3] ss:$0 sm:$0xff]  ;;  %s311_s3 = scalar_lea.vmem %s212_s23, 256 }
  0x2b   :  { %251 = vmatprep.subr.bf16.mxu0 %v250_v6  ;;  %v228_v49 = vld [vmem:[%s440_s4] ss:$0 sm:$0xff]  ;;  %p312_p2 = scmp.ne.s32.totalorder %s212_s23, %s311_s3  ;;  %p317_p4 = scmp.lt.s32.totalorder %s311_s3, %s311_s3 }
  0x2d   :  { %p318_p5 = por %p317_p4, %p316_p3 }
  0x2e   :  { %253 = vmatpush3.bf16.msra.mxu0 %v250_v6 }
  0x2f   :  { %p319_p6 = pnand %p318_p5, %p312_p2 }
  0x31   :  { %244 = vmatmul.mubr.msk.f32.vlgmr.msra.gmra.mrb[0].mxu0 %vm62_vm0, %v50_v7 }
 0x104   :  { %v245_v9 = vpop.f32.mrb[0].mxu0 }
 0x105   :  { %v141_v10 = vadd.f32 %v245_v9, %v224_v8  ;;  %v135_v11 = vpop.f32.mrb[1].mxu0 }
 0x106   :  { %v136_v12 = vadd.f32 %v224_v8, %v135_v11 }
 0x107   :  { %v147_v13 = vmul.f32 0.70710677, %v141_v10  ;;  %v145_v18 = vmul.f32 0.5, %v141_v10 }
 0x108   :  { %v146_v14 = vmul.f32 0.70710677, %v136_v12  ;;  %v144_v19 = vmul.f32 0.5, %v136_v12 }
 0x109   :  { %259 = verf.f32 %v147_v13 }
 0x10a   :  { %261 = verf.f32 %v146_v14 }
 0x113   :  { %v260_v15 = vpop.eup %259 }
 0x114   :  { %v262_v16 = vpop.eup %261  ;;  %v151_v17 = vadd.f32 1.0, %v260_v15 }
 0x115   :  { %v150_v20 = vadd.f32 1.0, %v262_v16 }
 0x116   :  { %v153_v21 = vmul.f32 %v151_v17, %v145_v18 }
 0x117   :  { %v152_v22 = vmul.f32 %v150_v20, %v144_v19 }
 0x118   :  { %v163_v26 = vmul.f32 %v153_v21, %v153_v21  ;;  %v157_v27 = vsel %vm62_vm0, %v153_v21, 0.0 }
 0x119   :  { %v154_v23 = vsel %vm62_vm0, %v152_v22, 0.0  ;;  %v162_v24 = vmul.f32 %v152_v22, %v152_v22 }
 0x11a   :  { %155 = vadd.xlane.f32.xlu0 %v154_v23  ;;  %v167_v28 = vsel %vm62_vm0, %v163_v26, 0.0 }
 0x11b   :  { %v164_v25 = vsel %vm62_vm0, %v162_v24, 0.0 }
 0x11c   :  { %165 = vadd.xlane.f32.xlu1 %v164_v25 }
 0x11e   :  { %158 = vadd.xlane.f32.xlu0 %v157_v27 }
 0x120   :  { %168 = vadd.xlane.f32.xlu1 %v167_v28 }
 0x1a7   :  { %v156_v29 = vpop.xlane.xlu0 %155 }
 0x1a8   :  { %v160_v30 = vmul.f32 0.03125, %v156_v29 }
 0x1a9   :  { %v166_v31 = vpop.xlane.xlu1 %165 }
 0x1aa   :  { %v172_v32 = vmul.f32 %v160_v30, %v160_v30  ;;  %v170_v33 = vmul.f32 0.03125, %v166_v31  ;;  %v182_v45 = vsub.f32 %v152_v22, %v160_v30 }
 0x1ab   :  { %v159_v34 = vpop.xlane.xlu0 %158 }
 0x1ac   :  { %v174_v35 = vsub.f32 %v170_v33, %v172_v32  ;;  %v161_v36 = vmul.f32 0.03125, %v159_v34 }
 0x1ad   :  { %v169_v37 = vpop.xlane.xlu1 %168 }
 0x1ae   :  { %v176_v38 = vmax.f32 %v174_v35, 0.0  ;;  %v173_v39 = vmul.f32 %v161_v36, %v161_v36  ;;  %v171_v40 = vmul.f32 0.03125, %v169_v37  ;;  %v183_v50 = vsub.f32 %v153_v21, %v161_v36 }
 0x1b0   :  { %v178_v41 = vadd.f32 1e-12, %v176_v38  ;;  %v175_v42 = vsub.f32 %v171_v40, %v173_v39 }
 0x1b2   :  { %263 = vrsqrt.f32 %v178_v41  ;;  %v177_v43 = vmax.f32 %v175_v42, 0.0 }
 0x1b4   :  { %v179_v44 = vadd.f32 1e-12, %v177_v43 }
 0x1b6   :  { %265 = vrsqrt.f32 %v179_v44 }
 0x1bc   :  { %v264_v46 = vpop.eup %263 }
 0x1bd   :  { %v184_v48 = vmul.f32 %v264_v46, %v182_v45 }
 0x1bf   :  { %v193_v51 = vmul.f32 %v227_v47, %v184_v48 }
 0x1c0   :  { %v266_v52 = vpop.eup %265 }
 0x1c1   :  { %v185_v53 = vmul.f32 %v266_v52, %v183_v50  ;;  %v202_v54 = vadd.f32 %v228_v49, %v193_v51 }
 0x1c3   :  { %v194_v55 = vmul.f32 %v227_v47, %v185_v53  ;;  %204 = vst.msk [vmem:[#allocation7] sm:$0xff] %vm62_vm0, %v202_v54 }
 0x1c5   :  { %v203_v56 = vadd.f32 %v228_v49, %v194_v55 }
 0x1c7   :  { %205 = vst.msk [vmem:[#allocation7 + $0x8] sm:$0xff] %vm62_vm0, %v203_v56 }
 0x1c8   :  { %322 = shalt.err (!%p319_p6)
}
 0x1c9   :  { %s323_s25 = scalar_lea.hbm %s441_s5, 256 }
 0x1ca   :  { %p324_p7 = scmp.ne.s32.totalorder %s441_s5, %s323_s25  ;;  %p327_p8 = scmp.lt.u32.totalorder %s323_s25, %s441_s5 }
 0x1cc   :  { %p329_p9 = pnand %p327_p8, %p324_p7 }
 0x1ce   :  { %332 = shalt.err (!%p329_p9)
}
 0x1cf   :  { %217 = dma.vmem_to_hbm [thread:$0]  %s212_s23, 256, %s441_s5, [#allocation4], %s340_s28, %s340_s28, %s341_s29  }
 0x1d0   :  { %337 = dma.done.wait [#allocation4], 256  }
 0x1d1   :  { %338 = vsyncadd [#allocation4], 4294967040 }
 0x1d2   :  { %221 = vsyncpa [#allocation3], 1 }
 0x1d3   :  { %222 = vsyncpa [#allocation6], 1 }
 0x1d4   :  { %223 = vsyncpa [#allocation4], 1 }

</bundles_post_ra>
